<compile_context>
chip_gen: v5e
topology: v5e:2x2
jax: 0.10.0
libtpu: 0.0.40
codegen_flags: <defaults>
</compile_context>

<pallas_src>
import math

import jax
import jax.numpy as jnp
from jax.experimental import pallas as pl
from jax.experimental.pallas import tpu as pltpu


def _round_up(n: int, m: int) -> int:
    return ((n + m - 1) // m) * m


def _pad_axis(a, axis, target):
    pad = target - a.shape[axis]
    if pad == 0:
        return a
    widths = [(0, 0)] * a.ndim
    widths[axis] = (0, pad)
    return jnp.pad(a, widths)


def _vmem_budget_bytes():
    """Generation-aware usable-VMEM budget and a small-VMEM (2-TensorCore) hint."""
    try:
        cap = int(pltpu.get_tpu_info().vmem_capacity_bytes)
    except Exception:
        cap = 128 << 20
    if cap <= (64 << 20) + (1 << 20):       # v7x-class: 64 MiB per TensorCore, 2 TCs
        return 56 << 20, True
    return 100 << 20, False                 # v5e / v6e: 128 MiB physical VMEM


# ----------------------------------------------------------------------------- kernels
def _rfgp_resident_kernel(x_ref, wp_ref, bp_ref, wo_ref, o_ref):
    """Weights fully VMEM-resident; grid = (batch tiles,). Single lane-dense store."""
    # z = X_tile @ Wp^T : contract in_features of both natural-layout operands (MXU "NT").
    z = jax.lax.dot_general(
        x_ref[...], wp_ref[...],
        dimension_numbers=(((1,), (1,)), ((), ())),
        preferred_element_type=jnp.float32,
    )
    # bias add + cos in f32 (range reduction; v5e has no bf16 VPU/EUP).
    feat = jnp.cos(z + bp_ref[...])
    # logits = feat @ Wo^T
    o_ref[...] = jax.lax.dot_general(
        feat.astype(wo_ref.dtype), wo_ref[...],
        dimension_numbers=(((1,), (1,)), ((), ())),
        preferred_element_type=jnp.float32,
    )


def _rfgp_streaming_kernel(x_ref, wp_ref, bp_ref, wo_ref, o_ref):
    """Grid: axis 0 = batch tiles (parallel), axis 1 = n_inducing tiles (reduction)."""
    j = pl.program_id(1)

    @pl.when(j == 0)
    def _():
        o_ref[...] = jnp.zeros_like(o_ref)

    z = jax.lax.dot_general(
        x_ref[...], wp_ref[...],
        dimension_numbers=(((1,), (1,)), ((), ())),
        preferred_element_type=jnp.float32,
    )
    feat = jnp.cos(z + bp_ref[...])
    o_ref[...] += jax.lax.dot_general(
        feat.astype(wo_ref.dtype), wo_ref[...],
        dimension_numbers=(((1,), (1,)), ((), ())),
        preferred_element_type=jnp.float32,
    )


# ----------------------------------------------------------------------------- wrapper
def prepare_rfgp_params(wp, bp, wo, mxu_dtype=jnp.bfloat16):
    """Pad/cast the (frozen) weights once, hoisted out of the per-call forward.

    wp: [n_inducing, in_features], bp: [n_inducing], wo: [out_features, n_inducing].
    Zero-padding Wo along n_inducing cancels the cos(0+0)=1 contribution of padded
    Wp rows, so the reduction stays exact.
    """
    n_ind, in_f = wp.shape
    out_f, _ = wo.shape
    inf_pad = _round_up(in_f, 128)
    nind_pad = _round_up(n_ind, 128)
    outf_pad = _round_up(out_f, 128)
    wpp = _pad_axis(_pad_axis(wp, 0, nind_pad), 1, inf_pad).astype(mxu_dtype)
    bpp = _pad_axis(bp.reshape(1, n_ind).astype(jnp.float32), 1, nind_pad)
    wop = _pad_axis(_pad_axis(wo, 0, outf_pad), 1, nind_pad).astype(mxu_dtype)
    return {
        "wp": wpp, "bp": bpp, "wo": wop,
        "in_features": in_f, "n_inducing": n_ind, "out_features": out_f,
        "mxu_dtype": mxu_dtype,
    }


def _streaming_specs(tile_b, tile_j, inf_pad, outf_pad, weight_buffers):
    def _wspec(shape, imap):
        if weight_buffers > 2:
            try:
                return pl.BlockSpec(shape, imap, pipeline_mode=pl.Buffered(weight_buffers))
            except TypeError:
                pass
        return pl.BlockSpec(shape, imap)

    return [
        pl.BlockSpec((tile_b, inf_pad), lambda i, j: (i, 0)),      # X batch tile
        _wspec((tile_j, inf_pad), lambda i, j: (j, 0)),            # Wp tile
        pl.BlockSpec((1, tile_j), lambda i, j: (0, j)),            # bias tile
        _wspec((outf_pad, tile_j), lambda i, j: (0, j)),           # Wo tile
    ]


def random_feature_gp_forward(x, params, *, tile_b=None, tile_j=None,
                              force_streaming=False):
    """x: [B, in_features]; params from prepare_rfgp_params. Returns logits [B, out]."""
    mxu_dtype = params["mxu_dtype"]
    itemsize = jnp.dtype(mxu_dtype).itemsize
    B, in_f = x.shape
    assert in_f == params["in_features"]
    wpp, bpp, wop = params["wp"], params["bp"], params["wo"]
    nind_pad, inf_pad = wpp.shape
    outf_pad, _ = wop.shape
    out_f = params["out_features"]

    budget, small_vmem = _vmem_budget_bytes()
    b16 = _round_up(max(B, 16), 16)                     # bf16 packs 16 rows per vreg

    # VMEM cost model pieces (bias block sublane-pads to 8 rows of f32).
    resident_bytes = (nind_pad * inf_pad * itemsize     # Wp (grid-invariant, 1 buffer)
                      + 8 * nind_pad * 4                # bias (grid-invariant)
                      + outf_pad * nind_pad * itemsize)  # Wo (grid-invariant)
    per_row_bytes = 2 * inf_pad * itemsize + 2 * outf_pad * 4  # X + f32 out, 2 buffers

    resident_ok = (not force_streaming) and (
        resident_bytes + 16 * per_row_bytes + (4 << 20) <= budget)

    # ---------------- resident-weight fast path --------------------------------
    if resident_ok:
        if tile_b is None:
            cap_rows = max(16, (budget - resident_bytes - (4 << 20)) // per_row_bytes)
            cand = min(512, b16, (cap_rows // 16) * 16)
            if small_vmem and b16 >= 32:
                # keep >= 2 batch tiles so the parallel axis feeds both v7x TCs
                cand = min(cand, max(16, ((b16 // 2) // 16) * 16))
            tile_b = 16
            for t in range(cand, 15, -16):
                if b16 % t == 0:
                    tile_b = t
                    break
        assert tile_b % 16 == 0 and b16 % tile_b == 0
        b_pad = b16
        xp = _pad_axis(_pad_axis(x, 0, b_pad), 1, inf_pad).astype(mxu_dtype)

        vmem_needed = (resident_bytes
                       + 2 * tile_b * inf_pad * itemsize
                       + 2 * tile_b * outf_pad * 4)
        vmem_limit = int(min(budget, max(32 << 20, vmem_needed + (8 << 20))))

        out = pl.pallas_call(
            _rfgp_resident_kernel,
            out_shape=jax.ShapeDtypeStruct((b_pad, outf_pad), jnp.float32),
            grid_spec=pltpu.PrefetchScalarGridSpec(
                num_scalar_prefetch=0,
                grid=(b_pad // tile_b,),
                in_specs=[
                    pl.BlockSpec((tile_b, inf_pad), lambda i: (i, 0)),    # X batch tile
                    pl.BlockSpec((nind_pad, inf_pad), lambda i: (0, 0)),  # Wp (resident)
                    pl.BlockSpec((1, nind_pad), lambda i: (0, 0)),        # bias (resident)
                    pl.BlockSpec((outf_pad, nind_pad), lambda i: (0, 0)),  # Wo (resident)
                ],
                out_specs=pl.BlockSpec((tile_b, outf_pad), lambda i: (i, 0)),
            ),
            compiler_params=pltpu.CompilerParams(
                dimension_semantics=("parallel",),
                vmem_limit_bytes=vmem_limit,
            ),
        )(xp, wpp, bpp, wop)
        return out[:B, :out_f].astype(x.dtype)

    # ---------------- streaming fallback (n_inducing too large for residency) --
    if tile_j is None:
        tile_j = 128
        for cand_j in (512, 384, 256, 128):
            if nind_pad % cand_j == 0:
                tile_j = cand_j
                break
    assert tile_j % 128 == 0 and nind_pad % tile_j == 0

    if tile_b is None:
        cand = min(256, b16)
        tile_b = 16
        for t in range(cand, 15, -16):
            if b16 % t == 0:
                tile_b = t
                break
    assert tile_b % 16 == 0 and b16 % tile_b == 0
    b_pad = b16
    xp = _pad_axis(_pad_axis(x, 0, b_pad), 1, inf_pad).astype(mxu_dtype)

    def stream_vmem(nbuf_w):
        return (nbuf_w * tile_j * inf_pad * itemsize      # Wp tiles
                + nbuf_w * outf_pad * tile_j * itemsize   # Wo tiles
                + nbuf_w * 8 * tile_j * 4                 # bias tiles (8-row padded)
                + 2 * tile_b * inf_pad * itemsize         # X (double-buffered)
                + 2 * tile_b * outf_pad * 4)              # resident f32 output block

    # Triple-buffer streamed weights if the budget closes (hides DMA at i -> i+1).
    weight_buffers = 3 if stream_vmem(3) + (4 << 20) <= budget else 2

    def _call(nbuf_w):
        vmem_limit = int(min(budget, max(32 << 20, stream_vmem(nbuf_w) + (8 << 20))))
        return pl.pallas_call(
            _rfgp_streaming_kernel,
            out_shape=jax.ShapeDtypeStruct((b_pad, outf_pad), jnp.float32),
            grid_spec=pltpu.PrefetchScalarGridSpec(
                num_scalar_prefetch=0,
                grid=(b_pad // tile_b, nind_pad // tile_j),
                in_specs=_streaming_specs(tile_b, tile_j, inf_pad, outf_pad, nbuf_w),
                out_specs=pl.BlockSpec((tile_b, outf_pad), lambda i, j: (i, 0)),
            ),
            compiler_params=pltpu.CompilerParams(
                dimension_semantics=("parallel", "arbitrary"),  # reduction axis last
                vmem_limit_bytes=vmem_limit,
            ),
        )(xp, wpp, bpp, wop)

    if weight_buffers > 2:
        try:
            out = _call(weight_buffers)
        except Exception:       # fall back to plain double-buffering if Buffered(3) rejects
            out = _call(2)
    else:
        out = _call(2)
    return out[:B, :out_f].astype(x.dtype)


# ----------------------------------------------------------------------------- init
def init_params(key, in_features, n_inducing, out_features):
    """Deterministic init matching the PyTorch module's __init__ statistics."""
    k_wp, k_bp, k_wo = jax.random.split(key, 3)
    # kaiming_normal_(a=sqrt(5)), fan_in mode: std = sqrt(2/(1+a^2)) / sqrt(fan_in)
    gain = math.sqrt(2.0 / (1.0 + 5.0))
    wp = jax.random.normal(k_wp, (n_inducing, in_features), jnp.float32) * (
        gain / math.sqrt(in_features))
    bp = jax.random.uniform(k_bp, (n_inducing,), jnp.float32, 0.0, 2.0 * math.pi)
    wo = jax.random.normal(k_wo, (out_features, n_inducing), jnp.float32) * (
        gain / math.sqrt(n_inducing))
    return wp, bp, wo


if __name__ == "__main__":
    # TODO(synk): with_variance=True (covariance path) and update_precision are
    # stateful torch-buffer operations outside the default forward; not kernelized.
    B, in_features, n_inducing, out_features = 16, 32, 256, 16

    key = jax.random.PRNGKey(0)
    k_x, k_params = jax.random.split(key)
    x = jax.random.normal(k_x, (B, in_features), jnp.float32)
    wp, bp, wo = init_params(k_params, in_features, n_inducing, out_features)

    prepared = prepare_rfgp_params(wp, bp, wo)   # pad/cast weights once (hoisted)

    # resident-weight fast path (default at these sizes)
    logits = jax.block_until_ready(random_feature_gp_forward(x, prepared))

    # streaming fallback path, forced, with a 2-step reduction to exercise the
    # accumulator + multi-buffered weight tiles
    logits_stream = jax.block_until_ready(
        random_feature_gp_forward(x, prepared, force_streaming=True,
                                  tile_b=16, tile_j=128))

    # pure-JAX reference with the same bf16 MXU-input rounding, f32 accumulation
    xb = x.astype(jnp.bfloat16).astype(jnp.float32)
    wpb = wp.astype(jnp.bfloat16).astype(jnp.float32)
    wob = wo.astype(jnp.bfloat16).astype(jnp.float32)
    feat_ref = jnp.cos(xb @ wpb.T + bp[None, :])
    logits_ref = feat_ref.astype(jnp.bfloat16).astype(jnp.float32) @ wob.T

    assert logits.shape == (B, out_features)
    assert jnp.allclose(logits, logits_ref, atol=2e-2, rtol=2e-2), (
        float(jnp.max(jnp.abs(logits - logits_ref))))
    assert jnp.allclose(logits_stream, logits_ref, atol=2e-2, rtol=2e-2), (
        float(jnp.max(jnp.abs(logits_stream - logits_ref))))

    print("KERNEL_OK")
</pallas_src>

<mosaic_0001>
module attributes {stable_mosaic.version = 11 : i64} {
  func.func @_rfgp_resident_kernel(%arg0: i32, %arg1: memref<16x128xbf16, #tpu.memory_space<vmem>>, %arg2: memref<256x128xbf16, #tpu.memory_space<vmem>>, %arg3: memref<1x256xf32, #tpu.memory_space<vmem>>, %arg4: memref<128x256xbf16, #tpu.memory_space<vmem>>, %arg5: memref<16x128xf32, #tpu.memory_space<vmem>>) attributes {dimension_semantics = [#tpu.dimension_semantics<parallel>], iteration_bounds = array<i64: 1>, scalar_prefetch = 0 : i64, scratch_operands = 0 : i64, tpu.core_type = #tpu.core_type<tc>, window_params = [{transform_indices = @transform_0, window_bounds = array<i64: 16, 128>}, {pipeline_mode = #tpu.pipeline_mode<synchronous>, transform_indices = @transform_1, window_bounds = array<i64: 256, 128>}, {pipeline_mode = #tpu.pipeline_mode<synchronous>, transform_indices = @transform_2, window_bounds = array<i64: 1, 256>}, {pipeline_mode = #tpu.pipeline_mode<synchronous>, transform_indices = @transform_3, window_bounds = array<i64: 128, 256>}, {transform_indices = @transform_4, window_bounds = array<i64: 16, 128>}]} {
    %c0 = arith.constant 0 : index
    %c0_0 = arith.constant 0 : index
    %0 = vector.load %arg1[%c0, %c0_0] : memref<16x128xbf16, #tpu.memory_space<vmem>>, vector<16x128xbf16>
    %c0_1 = arith.constant 0 : index
    %c0_2 = arith.constant 0 : index
    %1 = vector.load %arg2[%c0_1, %c0_2] : memref<256x128xbf16, #tpu.memory_space<vmem>>, vector<256x128xbf16>
    %cst = arith.constant dense<0.000000e+00> : vector<16x256xf32>
    %2 = tpu.matmul %0, %1, %cst {dimension_numbers = #tpu.dot_dimension_numbers<[1], [1], [0], [0], [0, 0, 1, 0], [], []>} : vector<16x128xbf16>, vector<256x128xbf16>, vector<16x256xf32> -> vector<16x256xf32>
    %c0_3 = arith.constant 0 : index
    %c0_4 = arith.constant 0 : index
    %3 = vector.load %arg3[%c0_3, %c0_4] : memref<1x256xf32, #tpu.memory_space<vmem>>, vector<1x256xf32>
    %4 = vector.broadcast %3 : vector<1x256xf32> to vector<16x256xf32>
    %5 = arith.addf %2, %4 : vector<16x256xf32>
    %6 = math.cos %5 : vector<16x256xf32>
    %7 = arith.truncf %6 : vector<16x256xf32> to vector<16x256xbf16>
    %c0_5 = arith.constant 0 : index
    %c0_6 = arith.constant 0 : index
    %8 = vector.load %arg4[%c0_5, %c0_6] : memref<128x256xbf16, #tpu.memory_space<vmem>>, vector<128x256xbf16>
    %cst_7 = arith.constant dense<0.000000e+00> : vector<16x128xf32>
    %9 = tpu.matmul %7, %8, %cst_7 {dimension_numbers = #tpu.dot_dimension_numbers<[1], [1], [0], [0], [0, 0, 1, 0], [], []>} : vector<16x256xbf16>, vector<128x256xbf16>, vector<16x128xf32> -> vector<16x128xf32>
    %c0_8 = arith.constant 0 : index
    %c0_9 = arith.constant 0 : index
    %10 = vector.load %arg5[%c0_8, %c0_9] : memref<16x128xf32, #tpu.memory_space<vmem>>, vector<16x128xf32>
    tpu.vector_store %arg5[%c0_8, %c0_9], %9 {strides = array<i32>} : memref<16x128xf32, #tpu.memory_space<vmem>>, vector<16x128xf32>,
    return
  }
  func.func @transform_0(%arg0: i32) -> (i32, i32) {
    %c0_i32 = arith.constant 0 : i32
    %c0_i32_0 = arith.constant 0 : i32
    return %arg0, %c0_i32 : i32, i32
  }
  func.func @transform_1(%arg0: i32) -> (i32, i32) {
    %c0_i32 = arith.constant 0 : i32
    %c0_i32_0 = arith.constant 0 : i32
    %c0_i32_1 = arith.constant 0 : i32
    return %c0_i32, %c0_i32_0 : i32, i32
  }
  func.func @transform_2(%arg0: i32) -> (i32, i32) {
    %c0_i32 = arith.constant 0 : i32
    %c0_i32_0 = arith.constant 0 : i32
    %c0_i32_1 = arith.constant 0 : i32
    return %c0_i32, %c0_i32_0 : i32, i32
  }
  func.func @transform_3(%arg0: i32) -> (i32, i32) {
    %c0_i32 = arith.constant 0 : i32
    %c0_i32_0 = arith.constant 0 : i32
    %c0_i32_1 = arith.constant 0 : i32
    return %c0_i32, %c0_i32_0 : i32, i32
  }
  func.func @transform_4(%arg0: i32) -> (i32, i32) {
    %c0_i32 = arith.constant 0 : i32
    %c0_i32_0 = arith.constant 0 : i32
    return %arg0, %c0_i32 : i32, i32
  }
}

</mosaic_0001>

<bundles_post_ra>
// kernel: tpu_custom_call.1
= control target key start
LH: loop header
LB: loop body
LE: loop exit
PB: predicated region body
PF: predicated region fallthrough
CT: control target
= control target key end

     0   :  { %9 = vsyncpa [#allocation3], 0  ;;  %s2061_s0 = inlined_call_operand.hbm [shape: bf16[16,128], index: 0, kind: input, shape index: {}]   ;;  %s2062_s1 = inlined_call_operand.hbm [shape: bf16[256,128], index: 1, kind: input, shape index: {}]   ;;  %s2063_s2 = inlined_call_operand.hbm [shape: f32[1,256], index: 2, kind: input, shape index: {}]   ;;  %s2064_s3 = inlined_call_operand.hbm [shape: bf16[128,256], index: 3, kind: input, shape index: {}]   ;;  %s2065_s4 = inlined_call_operand.hbm [shape: f32[16,128], index: 4, kind: output, shape index: {}]  }
   0x1   :  { %10 = vsyncpa [#allocation6], 0 }
   0x2   :  { %11 = vsyncpa [#allocation9], 0 }
   0x3   :  { %12 = vsyncpa [#allocation4], 0  ;;  %s30_s17 = sshll.u32 %s2062_s1, 4  ;;  %s1335_s18 = smov [#allocation5]   ;;  %s31_s17 = int_to_ptr.hbm [resolvable:$true] %s30_s17 }
   0x4   :  { %s32_s19 = sshll.u32 %s1335_s18, 4  ;;  %s17_s22 = sshll.u32 %s2061_s0, 4  ;;  %s33_s19 = int_to_ptr.vmem [resolvable:$true] %s32_s19  ;;  %s18_s22 = int_to_ptr.hbm [resolvable:$true] %s17_s22 }
   0x5   :  { %s1336_s23 = smov 64   ;;  %s1337_s24 = smov 4  }
   0x6   :  { %38 = dma.hbm_to_vmem [thread:$0]  %s31_s17, 2048, %s33_s19, [#allocation6], %s1336_s23, %s1336_s23, %s1337_s24  }
   0x7   :  { %s1338_s25 = smov [#allocation2]   ;;  %s44_s29 = sshll.u32 %s2063_s2, 4  ;;  %s45_s29 = int_to_ptr.hbm [resolvable:$true] %s44_s29 }
   0x8   :  { %s19_s26 = sshll.u32 %s1338_s25, 4  ;;  %s54_s5 = sshll.u32 %s2064_s3, 4  ;;  %s20_s26 = int_to_ptr.vmem [resolvable:$true] %s19_s26  ;;  %s55_s5 = int_to_ptr.hbm [resolvable:$true] %s54_s5 }
   0x9   :  { %25 = dma.hbm_to_vmem [thread:$0]  %s18_s22, 128, %s20_s26, [#allocation3], %s1336_s23, %s1336_s23, %s1337_s24  }
   0xa   :  { %s1339_s6 = smov [#allocation7]   ;;  %s1340_s0 = smov [#allocation8]  }
   0xb   :  { %s46_s7 = sshll.u32 %s1339_s6, 4  ;;  %s56_s8 = sshll.u32 %s1340_s0, 4  ;;  %s47_s7 = int_to_ptr.vmem [resolvable:$true] %s46_s7  ;;  %s57_s8 = int_to_ptr.vmem [resolvable:$true] %s56_s8 }
   0xc   :  { %49 = dma.hbm_to_vmem [thread:$0]  %s45_s29, 32, %s47_s7, [#allocation6]  }
   0xd   :  { %s1341_s9 = smov 128   ;;  %s1342_s10 = smov 8  }
   0xe   :  { %62 = dma.hbm_to_vmem [thread:$0]  %s55_s5, 2048, %s57_s8, [#allocation9], %s1341_s9, %s1341_s9, %s1342_s10  }
   0xf   :  { %1327 = dma.done.wait [#allocation3], 128  }
  0x10   :  { %1328 = vsyncadd [#allocation3], 4294967168 }
  0x11   :  { %1329 = dma.done.wait [#allocation6], 2080  }
  0x12   :  { %1330 = vsyncadd [#allocation6], 4294965216 }
  0x13   :  { %1331 = dma.done.wait [#allocation9], 2048  }
  0x14   :  { %1332 = vsyncadd [#allocation9], 4294965248  ;;  %v1166_v0 = vld [vmem:[#allocation5 + $0x38] sm:$0xff]  ;;  %v1165_v2 = vld [vmem:[#allocation5 + $0x30] sm:$0xff]  ;;  %v2079_v54 = vmov 2475754826  }
  0x15   :  { %v1174_v1 = vld [vmem:[#allocation5 + $0x78] sm:$0xff]  ;;  %221 = vmatpush.bf16.xpose.msra.mxu0 %v1166_v0  ;;  %v1173_v3 = vld [vmem:[#allocation5 + $0x70] sm:$0xff]  ;;  %v1164_v4 = vld [vmem:[#allocation5 + $0x28] sm:$0xff]  ;;  %v2077_v58 = vmov 2131351028   ;;  %s1350_s2 = smov [#allocation10]  }
  0x16   :  { %235 = vmatpush.bf16.xpose.msra.mxu1 %v1174_v1  ;;  %v1172_v5 = vld [vmem:[#allocation5 + $0x68] sm:$0xff]  ;;  %v1163_v6 = vld [vmem:[#allocation5 + $0x20] sm:$0xff]  ;;  %v1162_v8 = vld [vmem:[#allocation5 + $0x18] sm:$0xff]  ;;  %v2075_v60 = vmov 920167782   ;;  %s997_s3 = sshll.u32 %s1350_s2, 4  ;;  %s998_s3 = int_to_ptr.vmem [resolvable:$true] %s997_s3 }
  0x17   :  { %v1171_v7 = vld [vmem:[#allocation5 + $0x60] sm:$0xff]  ;;  %v1170_v9 = vld [vmem:[#allocation5 + $0x58] sm:$0xff]  ;;  %v1161_v10 = vld [vmem:[#allocation5 + $0x10] sm:$0xff]  ;;  %v2087_v0 = vmov 683565275   ;;  %s999_s13 = sshll.u32 %s2065_s4, 4  ;;  %s1000_s13 = int_to_ptr.hbm [resolvable:$true] %s999_s13 }
  0x18   :  { %v1169_v11 = vld [vmem:[#allocation5 + $0x50] sm:$0xff]  ;;  %v1160_v12 = vld [vmem:[#allocation5 + $0x8] sm:$0xff]  ;;  %v1159_v14 = vld [vmem:[#allocation5] sm:$0xff] }
  0x19   :  { %v1168_v13 = vld [vmem:[#allocation5 + $0x48] sm:$0xff]  ;;  %v1167_v15 = vld [vmem:[#allocation5 + $0x40] sm:$0xff]  ;;  %v1158_v16 = vld [vmem:[#allocation2] sm:$0xff] }
  0x1a   :  { %v113_v17 = vld [vmem:[#allocation7] sm:$0x3] }
  0x1b   :  { %v115_v18 = vperm.slane %v113_v17, 0  ;;  %v116_v19 = vperm.slane %v113_v17, 1 }
  0x1d   :  { %222 = vmatpush.bf16.xpose.msra.mxu0 %v1165_v2  ;;  %v2071_v2 = vmov 2102212464  }
  0x1e   :  { %236 = vmatpush.bf16.xpose.msra.mxu1 %v1173_v3 }
  0x25   :  { %223 = vmatpush.bf16.xpose.msra.mxu0 %v1164_v4  ;;  %v2070_v4 = vmov 1326507024  }
  0x26   :  { %237 = vmatpush.bf16.xpose.msra.mxu1 %v1172_v5 }
  0x2d   :  { %224 = vmatpush.bf16.xpose.msra.mxu0 %v1163_v6 }
  0x2e   :  { %238 = vmatpush.bf16.xpose.msra.mxu1 %v1171_v7 }
  0x35   :  { %225 = vmatpush.bf16.xpose.msra.mxu0 %v1162_v8 }
  0x36   :  { %239 = vmatpush.bf16.xpose.msra.mxu1 %v1170_v9 }
  0x3d   :  { %226 = vmatpush.bf16.xpose.msra.mxu0 %v1161_v10 }
  0x3e   :  { %240 = vmatpush.bf16.xpose.msra.mxu1 %v1169_v11 }
  0x45   :  { %227 = vmatpush.bf16.xpose.msra.mxu0 %v1160_v12 }
  0x46   :  { %241 = vmatpush.bf16.xpose.msra.mxu1 %v1168_v13 }
  0x4d   :  { %228 = vmatpush.bf16.xpose.msra.mxu0 %v1159_v14  ;;  %v1152_v14 = vld [vmem:[#allocation8 + $0x70] sm:$0xf] }
  0x4e   :  { %242 = vmatpush.bf16.xpose.msra.mxu1 %v1167_v15  ;;  %v1190_v15 = vld [vmem:[#allocation8 + $0x74] sm:$0xf0] }
  0x54   :  { %229 = vmatmul.bf16.vlgmr.msra.gmra.mxu0 %v1158_v16 }
  0x55   :  { %243 = vmatmul.bf16.vlgmr.msra.gmra.mxu1 %v1158_v16 }
  0xd1   :  { %v230_v20 = vpop.f32.mrf.mxu0 }
  0xd2   :  { %v244_v21 = vpop.f32.mrf.mxu1  ;;  %v1391_v22 = vadd.f32 %v230_v20, %v115_v18  ;;  %v1189_v20 = vld [vmem:[#allocation8 + $0x74] sm:$0xf] }
  0xd3   :  { %v1393_v23 = vadd.f32 %v244_v21, %v116_v19  ;;  %v1154_v21 = vld [vmem:[#allocation8 + $0x78] sm:$0xf0] }
  0xd4   :  { %2099 = vst [vmem:[#allocation15_spill] sm:$0xff] %v1391_v22  ;;  %v252_v24 = vand.u32 2139095040, %v1391_v22  ;;  %v2069_v26 = vand.u32 2147483647, %v1391_v22 }
  0xd5   :  { %2100 = vst [vmem:[#allocation16_spill] sm:$0xff] %v1393_v23  ;;  %v406_v25 = vand.u32 2139095040, %v1393_v23  ;;  %v2067_v28 = vand.u32 2147483647, %v1393_v23 }
  0xd6   :  { %v253_v27 = vshrl.u32 %v252_v24, 23  ;;  %v256_v32 = vand.u32 8388607, %v2069_v26 }
  0xd7   :  { %v407_v29 = vshrl.u32 %v406_v25, 23  ;;  %v410_v34 = vand.u32 8388607, %v2067_v28 }
  0xd8   :  { %v1082_v30 = vadd.s32 4294967169, %v253_v27  ;;  %v257_v37 = vor.u32 8388608, %v256_v32 }
  0xd9   :  { %v1085_v31 = vadd.s32 4294967169, %v407_v29  ;;  %v411_v38 = vor.u32 8388608, %v410_v34  ;;  %v232_v39 = vpop.f32.mrf.mxu0 }
  0xda   :  { %v259_v33 = vadd.s32 1, %v1082_v30  ;;  %v1403_v42 = vadd.f32 %v232_v39, %v115_v18  ;;  %v1405_v43 = vshll.u32 %v257_v37, 8  ;;  %v246_v46 = vpop.f32.mrf.mxu1  ;;  %v1157_v37 = vor.u32 %v1189_v20, %v1154_v21 }
  0xdb   :  { %v413_v35 = vadd.s32 1, %v1085_v31  ;;  %v1407_v44 = vshll.u32 %v411_v38, 8  ;;  %v1423_v52 = vadd.f32 %v246_v46, %v116_v19  ;;  %v1144_v46 = vld [vmem:[#allocation8 + $0x60] sm:$0xf] }
  0xdc   :  { %vm260_vm0 = vcmp.gt.s32.totalorder %v259_v33, 0  ;;  %2101 = vst [vmem:[#allocation17_spill] sm:$0xff] %v1403_v42  ;;  %v2068_v48 = vand.u32 2147483647, %v1403_v42  ;;  %v1415_v49 = vand.u32 65535, %v1405_v43  ;;  %v1418_v50 = vshrl.u32 %v1405_v43, 16  ;;  %977 = vmatpush.bf16.xpose.msra.mxu3 %v1157_v37 }
  0xdd   :  { %v261_v36 = vsel %vm260_vm0, %v259_v33, 0  ;;  %vm414_vm1 = vcmp.gt.s32.totalorder %v413_v35, 0  ;;  %2102 = vst [vmem:[#allocation18_spill] sm:$0xff] %v1407_v44  ;;  %v1421_v51 = vand.u32 65535, %v1407_v44  ;;  %v1430_v56 = vshrl.u32 %v1407_v44, 16 }
  0xde   :  { %v263_v40 = vand.u32 31, %v261_v36  ;;  %v415_v41 = vsel %vm414_vm1, %v413_v35, 0  ;;  %2103 = vst [vmem:[#allocation19_spill] sm:$0xff] %v1423_v52  ;;  %v1425_v53 = vshrl.u32 %v261_v36, 5  ;;  %v560_v57 = vand.u32 2139095040, %v1403_v42 }
  0xdf   :  { %v1411_v47 = vand.u32 31, %v415_v41  ;;  %2104 = vst [vmem:[#allocation20_spill] sm:$0xff] %v1430_v56  ;;  %v1437_v62 = vshrl.u32 %v415_v41, 5  ;;  %v564_v6 = vand.u32 8388607, %v2068_v48  ;;  %v714_v19 = vand.u32 2139095040, %v1423_v52 }
  0xe0   :  { %v1409_v45 = vsub.s32 32, %v263_v40  ;;  %v266_v1 = vshll.u32 %v2087_v0, %v263_v40  ;;  %v269_v7 = vshll.u32 %v2079_v54, %v263_v40  ;;  %v272_v8 = vshll.u32 %v2077_v58, %v263_v40 }
  0xe1   :  { %v1440_v63 = vsub.s32 32, %v1411_v47  ;;  %v275_v9 = vshll.u32 %v2071_v2, %v263_v40  ;;  %v278_v10 = vshll.u32 %v2075_v60, %v263_v40  ;;  %vm284_vm2 = vcmp.lt.s32.totalorder %v1425_v53, 4 }
  0xe2   :  { %v267_v55 = vshrl.u32 %v2079_v54, %v1409_v45  ;;  %v270_v59 = vshrl.u32 %v2077_v58, %v1409_v45  ;;  %v276_v61 = vshrl.u32 %v2075_v60, %v1409_v45  ;;  %v273_v3 = vshrl.u32 %v2071_v2, %v1409_v45 }
  0xe3   :  { %2105 = vst [vmem:[#allocation21_spill] sm:$0xff] %v1440_v63  ;;  %v279_v5 = vshrl.u32 %v2070_v4, %v1409_v45  ;;  %v420_v12 = vshll.u32 %v2087_v0, %v1411_v47  ;;  %v561_v13 = vshrl.u32 %v560_v57, 23  ;;  %v430_v18 = vshrl.u32 %v2075_v60, %v1440_v63 }
  0xe4   :  { %v1453_v11 = vor.u32 %v267_v55, %v266_v1  ;;  %v1458_v16 = vor.u32 %v270_v59, %v269_v7  ;;  %v277_v17 = vor.u32 %v276_v61, %v275_v9  ;;  %v1463_v24 = vor.u32 %v273_v3, %v272_v8  ;;  %v1188_v55 = vld [vmem:[#allocation8 + $0x64] sm:$0xf0]  ;;  %v1187_v1 = vld [vmem:[#allocation8 + $0x64] sm:$0xf]  ;;  %v1146_v9 = vld [vmem:[#allocation8 + $0x68] sm:$0xf0] }
  0xe5   :  { %v280_v25 = vor.u32 %v279_v5, %v278_v10  ;;  %vm281_vm3 = vcmp.lt.s32.totalorder %v1425_v53, 1  ;;  %v429_v27 = vshll.u32 %v2071_v2, %v1411_v47  ;;  %v1088_v29 = vadd.s32 4294967169, %v561_v13 }
  0xe6   :  { %v433_v30 = vshrl.u32 %v2070_v4, %v1440_v63  ;;  %v2066_v31 = vand.u32 2147483647, %v1423_v52  ;;  %v715_v32 = vshrl.u32 %v714_v19, 23  ;;  %v1153_v33 = vor.u32 %v1190_v15, %v1152_v14 }
  0xe7   :  { %v421_v34 = vshrl.u32 %v2079_v54, %v1440_v63  ;;  %v424_v35 = vshrl.u32 %v2077_v58, %v1440_v63  ;;  %v567_v36 = vadd.s32 1, %v1088_v29  ;;  %v290_v38 = vsel %vm284_vm2, %v277_v17, 920167782 }
  0xe8   :  { %v427_v39 = vshrl.u32 %v2071_v2, %v1440_v63  ;;  %v431_v40 = vor.u32 %v430_v18, %v429_v27  ;;  %v432_v41 = vshll.u32 %v2075_v60, %v1411_v47  ;;  %963 = vmatpush.bf16.xpose.msra.mxu2 %v1153_v33  ;;  %v423_v57 = vshll.u32 %v2079_v54, %v1411_v47  ;;  %v1136_v33 = vld [vmem:[#allocation8 + $0x50] sm:$0xf] }
  0xe9   :  { %v565_v59 = vor.u32 8388608, %v564_v6  ;;  %vm568_vm4 = vcmp.gt.s32.totalorder %v567_v36, 0  ;;  %v1091_v61 = vadd.s32 4294967169, %v715_v32  ;;  %v426_v3 = vshll.u32 %v2077_v58, %v1411_v47 }
  0xea   :  { %v434_v5 = vor.u32 %v433_v30, %v432_v41  ;;  %v569_v7 = vsel %vm568_vm4, %v567_v36, 0  ;;  %v718_v8 = vand.u32 8388607, %v2066_v31  ;;  %v294_v10 = vsel %vm284_vm2, %v280_v25, 1326507024 }
  0xeb   :  { %v1489_v13 = vor.u32 %v421_v34, %v420_v12  ;;  %vm438_vm5 = vcmp.lt.s32.totalorder %v1437_v62, 4  ;;  %v571_v6 = vand.u32 31, %v569_v7  ;;  %v1492_v14 = vor.u32 %v424_v35, %v423_v57  ;;  %v1186_v34 = vld [vmem:[#allocation8 + $0x54] sm:$0xf0] }
  0xec   :  { %v1494_v15 = vor.u32 %v427_v39, %v426_v3  ;;  %v444_v47 = vsel %vm438_vm5, %v431_v40, 920167782  ;;  %v1145_v18 = vor.u32 %v1188_v55, %v1144_v46  ;;  %v1500_v20 = vshll.u32 %v565_v59, 8  ;;  %v1185_v46 = vld [vmem:[#allocation8 + $0x54] sm:$0xf] }
  0xed   :  { %2106 = vst [vmem:[#allocation22_spill] sm:$0xff] %v1489_v13  ;;  %v1498_v19 = vsub.s32 32, %v571_v6  ;;  %v721_v21 = vadd.s32 1, %v1091_v61  ;;  %v1149_v27 = vor.u32 %v1187_v1, %v1146_v9  ;;  %vm283_vm6 = vcmp.lt.s32.totalorder %v1425_v53, 3  ;;  %v1138_v55 = vld [vmem:[#allocation8 + $0x58] sm:$0xf0] }
  0xee   :  { %2107 = vst [vmem:[#allocation23_spill] sm:$0xff] %v1492_v14  ;;  %v1507_v12 = vsel %vm281_vm3, %v1453_v11, %v1458_v16  ;;  %v448_v25 = vsel %vm438_vm5, %v434_v5, 1326507024  ;;  %v719_v29 = vor.u32 8388608, %v718_v8  ;;  %v1514_v30 = vsel %vm283_vm6, %v1463_v24, %v290_v38  ;;  %v1561_v1 = vld [vmem:[#allocation8 + $0x40] sm:$0xf] }
  0xef   :  { %2108 = vst [vmem:[#allocation24_spill] sm:$0xff] %v1494_v15  ;;  %v1520_v32 = vsel %vm281_vm3, %v1458_v16, %v1463_v24  ;;  %vm435_vm7 = vcmp.lt.s32.totalorder %v1437_v62, 1  ;;  %vm437_vm8 = vcmp.lt.s32.totalorder %v1437_v62, 3  ;;  %v1526_v35 = vsel %vm283_vm6, %v277_v17, %v294_v10  ;;  %978 = vmatpush.bf16.xpose.msra.mxu3 %v1149_v27  ;;  %v1570_v10 = vld [vmem:[#allocation8 + $0x44] sm:$0xf0] }
  0xf0   :  { %2109 = vst [vmem:[#allocation25_spill] sm:$0xff] %v1500_v20  ;;  %v1532_v36 = vsel %vm435_vm7, %v1489_v13, %v1492_v14  ;;  %v1537_v37 = vsel %vm437_vm8, %v1494_v15, %v444_v47  ;;  %v1543_v38 = vsel %vm435_vm7, %v1492_v14, %v1494_v15  ;;  %964 = vmatpush.bf16.xpose.msra.mxu2 %v1145_v18  ;;  %v1552_v41 = vand.u32 65535, %v1500_v20  ;;  %v1572_v47 = vld [vmem:[#allocation8 + $0x44] sm:$0xf]  ;;  %v1574_v18 = vld [vmem:[#allocation8 + $0x48] sm:$0xf0] }
  0xf1   :  { %v1547_v17 = vsel %vm437_vm8, %v431_v40, %v448_v25  ;;  %v584_v39 = vshrl.u32 %v2075_v60, %v1498_v19  ;;  %vm722_vm9 = vcmp.gt.s32.totalorder %v721_v21, 0  ;;  %v587_v57 = vshrl.u32 %v2070_v4, %v1498_v19  ;;  %v1585_v4 = vld [vmem:[#allocation8 + $0x34] sm:$0xf0] }
  0xf2   :  { %v1557_v59 = vshrl.u32 %v1500_v20, 16  ;;  %v1559_v61 = vshll.u32 %v719_v29, 8  ;;  %v1137_v40 = vor.u32 %v1186_v34, %v1136_v33  ;;  %v575_v3 = vshrl.u32 %v2079_v54, %v1498_v19  ;;  %v1580_v34 = vld [vmem:[#allocation8 + $0x30] sm:$0xf] }
  0xf3   :  { %v578_v5 = vshrl.u32 %v2077_v58, %v1498_v19  ;;  %v581_v8 = vshrl.u32 %v2071_v2, %v1498_v19  ;;  %v583_v9 = vshll.u32 %v2071_v2, %v571_v6  ;;  %v1576_v27 = vshrl.u32 %v569_v7, 5  ;;  %v1587_v2 = vld [vmem:[#allocation8 + $0x34] sm:$0xf]  ;;  %v1589_v7 = vld [vmem:[#allocation8 + $0x38] sm:$0xf0] }
  0xf4   :  { %2110 = vst [vmem:[#allocation26_spill] sm:$0xff] %v1559_v61  ;;  %v586_v25 = vshll.u32 %v2075_v60, %v571_v6  ;;  %v723_v29 = vsel %vm722_vm9, %v721_v21, 0  ;;  %v1141_v33 = vor.u32 %v1185_v46, %v1138_v55  ;;  %v574_v31 = vshll.u32 %v2087_v0, %v571_v6  ;;  %v1598_v55 = vld [vmem:[#allocation8 + $0x20] sm:$0xf] }
  0xf5   :  { %v577_v28 = vshll.u32 %v2079_v54, %v571_v6  ;;  %v580_v48 = vshll.u32 %v2077_v58, %v571_v6  ;;  %v585_v26 = vor.u32 %v584_v39, %v583_v9  ;;  %v1592_v60 = vand.u32 65535, %v1559_v61  ;;  %v1600_v6 = vld [vmem:[#allocation8 + $0x24] sm:$0xf0]  ;;  %v1612_v54 = vld [vmem:[#allocation8 + $0x28] sm:$0xf0] }
  0xf6   :  { %v588_v52 = vor.u32 %v587_v57, %v586_v25  ;;  %v1129_v21 = vor.u32 %v1570_v10, %v1561_v1  ;;  %v1133_v46 = vor.u32 %v1572_v47, %v1574_v18  ;;  %v1602_v39 = vor.u32 %v575_v3, %v574_v31  ;;  %v1610_v25 = vld [vmem:[#allocation8 + $0x24] sm:$0xf] }
  0xf7   :  { %2111 = vst [vmem:[#allocation27_spill] sm:$0xff] %v1592_v60  ;;  %v1604_v9 = vor.u32 %v578_v5, %v577_v28  ;;  %v1606_v58 = vor.u32 %v581_v8, %v580_v48  ;;  %v1608_v57 = vand.u32 31, %v723_v29  ;;  %vm589_vm10 = vcmp.lt.s32.totalorder %v1576_v27, 1  ;;  %979 = vmatpush.bf16.xpose.msra.mxu3 %v1141_v33  ;;  %v1628_v5 = vld [vmem:[#allocation8 + $0x10] sm:$0xf] }
  0xf8   :  { %vm591_vm11 = vcmp.lt.s32.totalorder %v1576_v27, 3  ;;  %vm592_vm12 = vcmp.lt.s32.totalorder %v1576_v27, 4  ;;  %v1618_v1 = vshrl.u32 %v1559_v61, 16  ;;  %965 = vmatpush.bf16.xpose.msra.mxu2 %v1137_v40  ;;  %v1630_v8 = vld [vmem:[#allocation8 + $0x14] sm:$0xf0]  ;;  %v1634_v10 = vshrl.u32 %v723_v29, 5 }
  0xf9   :  { %v598_v28 = vsel %vm592_vm12, %v585_v26, 920167782  ;;  %v602_v40 = vsel %vm592_vm12, %v588_v52, 1326507024  ;;  %v265_v18 = vshrl.u32 %v2087_v0, %v1409_v45  ;;  %v597_v33 = vsel %vm589_vm10, %v1602_v39, %v1604_v9 }
  0xfa   :  { %2112 = vst [vmem:[#allocation28_spill] sm:$0xff] %v1618_v1  ;;  %v601_v3 = vsel %vm589_vm10, %v1604_v9, %v1606_v58  ;;  %v1649_v52 = vsub.s32 32, %v1608_v57  ;;  %vm282_vm13 = vcmp.lt.s32.totalorder %v1425_v53, 2  ;;  %v599_v29 = vsel %vm591_vm11, %v1606_v58, %v598_v28 }
  0xfb   :  { %v292_v47 = vsel %vm282_vm13, %v1507_v12, %v1514_v30  ;;  %v296_v31 = vsel %vm282_vm13, %v1520_v32, %v1526_v35  ;;  %v603_v48 = vsel %vm591_vm11, %v585_v26, %v602_v40  ;;  %v1669_v23 = vshll.u32 %v2087_v0, %v1608_v57 }
  0xfc   :  { %v300_v28 = vand.u32 65535, %v296_v31  ;;  %v301_v61 = vshrl.u32 %v296_v31, 16  ;;  %v2113_v45 = vmov 2475754826   ;;  %v2114_v12 = vmov 2131351028  }
  0xfd   :  { %v1673_v1 = vshll.u32 %v2113_v45, %v1608_v57  ;;  %v1677_v30 = vshll.u32 %v2114_v12, %v1608_v57  ;;  %v322_v60 = vand.u32 65535, %v292_v47  ;;  %v323_v44 = vshrl.u32 %v292_v47, 16 }
  0xfe   :  { %v1681_v32 = vshrl.u32 %v2113_v45, %v1649_v52  ;;  %v2115_v26 = vmov 2102212464   ;;  %v303_v31 = vmul.u32 %v301_v61, %v1415_v49  ;;  %v304_v40 = vmul.u32 %v300_v28, %v1418_v50 }
  0xff   :  { %v1685_v35 = vshll.u32 %v2115_v26, %v1608_v57  ;;  %v1691_v0 = vshrl.u32 %v2114_v12, %v1649_v52  ;;  %v1695_v42 = vshrl.u32 %v2115_v26, %v1649_v52  ;;  %v325_v47 = vmul.u32 %v323_v44, %v1415_v49  ;;  %980 = vmatpush.bf16.xpose.msra.mxu3 %v1133_v46 }
 0x100   :  { %966 = vmatpush.bf16.xpose.msra.mxu2 %v1129_v21  ;;  %v326_v45 = vmul.u32 %v322_v60, %v1418_v50  ;;  %v285_v14 = vsel %vm281_vm3, %v265_v18, %v1453_v11  ;;  %v302_v13 = vmul.u32 %v300_v28, %v1415_v49  ;;  %v306_v15 = vshll.u32 %v303_v31, 16 }
 0x101   :  { %2116 = vst [vmem:[#allocation29_spill] sm:$0xff] %v1685_v35  ;;  %v286_v12 = vsel %vm284_vm2, %v1463_v24, 2102212464  ;;  %v305_v26 = vmul.u32 %v301_v61, %v1418_v50  ;;  %v324_v21 = vmul.u32 %v322_v60, %v1415_v49  ;;  %v328_v22 = vshll.u32 %v325_v47, 16 }
 0x102   :  { %v308_v63 = vshll.u32 %v304_v40, 16  ;;  %vm310_vm14 = vc.u32 %v302_v13, %v306_v15  ;;  %v312_v20 = vadd.s32 %v306_v15, %v302_v13  ;;  %v327_v46 = vmul.u32 %v323_v44, %v1418_v50 }
 0x103   :  { %v1349_v35 = vmov 0   ;;  %v330_v18 = vshll.u32 %v326_v45, 16  ;;  %vm332_vm15 = vc.u32 %v324_v21, %v328_v22  ;;  %v334_v28 = vadd.s32 %v328_v22, %v324_v21 }
 0x104   :  { %v311_v11 = vsel %vm310_vm14, 1, %v1349_v35  ;;  %v287_v24 = vsel %vm283_vm6, %v1458_v16, %v286_v12  ;;  %vm314_vm0 = vc.u32 %v312_v20, %v308_v63  ;;  %v333_v49 = vsel %vm332_vm15, 1, %v1349_v35 }
 0x105   :  { %v313_v56 = vadd.s32 %v311_v11, %v305_v26  ;;  %v315_v60 = vsel %vm314_vm0, 1, %v1349_v35  ;;  %v335_v61 = vadd.s32 %v333_v49, %v327_v46  ;;  %vm336_vm1 = vc.u32 %v334_v28, %v330_v18 }
 0x106   :  { %vm590_vm2 = vcmp.lt.s32.totalorder %v1576_v27, 2  ;;  %v307_v44 = vshrl.u32 %v303_v31, 16  ;;  %v337_v13 = vsel %vm336_vm1, 1, %v1349_v35  ;;  %v2117_v16 = vor.u32 %v1585_v4, %v1580_v34 }
 0x107   :  { %v317_v50 = vadd.s32 %v315_v60, %v313_v56  ;;  %v600_v22 = vsel %vm590_vm2, %v597_v33, %v599_v29  ;;  %v288_v63 = vsel %vm282_vm13, %v285_v14, %v287_v24  ;;  %v329_v15 = vshrl.u32 %v325_v47, 16 }
 0x108   :  { %967 = vmatpush.bf16.xpose.msra.mxu2 %v2117_v16  ;;  %v339_v20 = vadd.s32 %v337_v13, %v335_v61  ;;  %v604_v12 = vsel %vm590_vm2, %v601_v3, %v603_v48  ;;  %v2118_v56 = vor.u32 %v1587_v2, %v1589_v7  ;;  %v309_v31 = vshrl.u32 %v304_v40, 16 }
 0x109   :  { %v318_v26 = vadd.s32 %v317_v50, %v307_v44  ;;  %v608_v21 = vand.u32 65535, %v604_v12  ;;  %v609_v33 = vshrl.u32 %v604_v12, 16  ;;  %v331_v29 = vshrl.u32 %v326_v45, 16 }
 0x10a   :  { %981 = vmatpush.bf16.xpose.msra.mxu3 %v2118_v56  ;;  %v340_v46 = vadd.s32 %v339_v20, %v329_v15  ;;  %v630_v4 = vand.u32 65535, %v600_v22  ;;  %v631_v34 = vshrl.u32 %v600_v22, 16  ;;  %v1731_v53 = vadd.s32 %v334_v28, %v330_v18  ;;  %v1106_v15 = vld [vmem:[#allocation8 + $0x18] sm:$0xf0] }
 0x10b   :  { %v1729_v11 = vadd.s32 %v318_v26, %v309_v31  ;;  %v611_v14 = vmul.u32 %v609_v33, %v1552_v41  ;;  %v612_v48 = vmul.u32 %v608_v21, %v1557_v59  ;;  %v2119_v3 = vmov 920167782  }
 0x10c   :  { %v1737_v2 = vshrl.u32 %v2119_v3, %v1649_v52  ;;  %v1741_v7 = vshll.u32 %v2119_v3, %v1608_v57  ;;  %v341_v40 = vadd.s32 %v340_v46, %v331_v29  ;;  %v633_v47 = vmul.u32 %v631_v34, %v1552_v41 }
 0x10d   :  { %v342_v45 = vmul.u32 %v1405_v43, %v288_v63  ;;  %vm344_vm3 = vc.u32 %v1729_v11, %v1731_v53  ;;  %v610_v18 = vmul.u32 %v608_v21, %v1552_v41  ;;  %v614_v28 = vshll.u32 %v611_v14, 16  ;;  %v1177_v63 = vld [vmem:[#allocation8 + $0x14] sm:$0xf] }
 0x10e   :  { %v345_v24 = vadd.s32 1, %v341_v40  ;;  %v632_v49 = vmul.u32 %v630_v4, %v1552_v41  ;;  %v634_v60 = vmul.u32 %v630_v4, %v1557_v59  ;;  %v636_v61 = vshll.u32 %v633_v47, 16 }
 0x10f   :  { %v613_v57 = vmul.u32 %v609_v33, %v1557_v59  ;;  %v616_v44 = vshll.u32 %v612_v48, 16  ;;  %vm618_vm4 = vc.u32 %v610_v18, %v614_v28  ;;  %v620_v50 = vadd.s32 %v614_v28, %v610_v18 }
 0x110   :  { %v2120_v43 = vor.u32 %v1600_v6, %v1598_v55  ;;  %v346_v13 = vsel %vm344_vm3, %v345_v24, %v341_v40  ;;  %v619_v22 = vsel %vm618_vm4, 1, %v1349_v35  ;;  %v635_v16 = vmul.u32 %v631_v34, %v1557_v59 }
 0x111   :  { %vm640_vm6 = vc.u32 %v632_v49, %v636_v61  ;;  %v2121_v41 = vor.u32 %v1610_v25, %v1612_v54  ;;  %v347_v20 = vadd.s32 %v346_v13, %v342_v45  ;;  %v621_v12 = vadd.s32 %v619_v22, %v613_v57 }
 0x112   :  { %968 = vmatpush.bf16.xpose.msra.mxu2 %v2120_v43  ;;  %vm622_vm9 = vc.u32 %v620_v50, %v616_v44  ;;  %v641_v56 = vsel %vm640_vm6, 1, %v1349_v35  ;;  %v638_v6 = vshll.u32 %v634_v60, 16  ;;  %v642_v31 = vadd.s32 %v636_v61, %v632_v49 }
 0x113   :  { %982 = vmatpush.bf16.xpose.msra.mxu3 %v2121_v41  ;;  %v623_v55 = vsel %vm622_vm9, 1, %v1349_v35  ;;  %v643_v26 = vadd.s32 %v641_v56, %v635_v16  ;;  %v2122_v21 = vmov 1326507024   ;;  %v348_v33 = vadd.s32 536870912, %v347_v20  ;;  %v2126_v16 = vld [vmem:[#allocation29_spill] sm:$0xff] }
 0x114   :  { %v1763_v59 = vshrl.u32 %v2122_v21, %v1649_v52  ;;  %v615_v29 = vshrl.u32 %v611_v14, 16  ;;  %v625_v54 = vadd.s32 %v623_v55, %v621_v12  ;;  %v1109_v25 = vor.u32 %v1177_v63, %v1106_v15 }
 0x115   :  { %v2123_v46 = vmov 683565275   ;;  %v594_v34 = vsel %vm592_vm12, %v1606_v58, 2102212464  ;;  %vm644_vm13 = vc.u32 %v642_v31, %v638_v6  ;;  %v1770_v3 = vshrl.u32 %v348_v33, 30 }
 0x116   :  { %v573_v4 = vshrl.u32 %v2123_v46, %v1498_v19  ;;  %v617_v40 = vshrl.u32 %v612_v48, 16  ;;  %v626_v45 = vadd.s32 %v625_v54, %v615_v29  ;;  %v645_v18 = vsel %vm644_vm13, 1, %v1349_v35 }
 0x117   :  { %v1775_v28 = vor.u32 %v1681_v32, %v1669_v23  ;;  %v637_v19 = vshrl.u32 %v633_v47, 16  ;;  %v647_v24 = vadd.s32 %v645_v18, %v643_v26  ;;  %v350_v49 = vshll.u32 %v1770_v3, 30  ;;  %v1176_v47 = vld [vmem:[#allocation8 + $0x4] sm:$0xf0] }
 0x118   :  { %v593_v14 = vsel %vm589_vm10, %v573_v4, %v1602_v39  ;;  %v595_v58 = vsel %vm591_vm11, %v1604_v9, %v594_v34  ;;  %v1784_v48 = vadd.s32 %v626_v45, %v617_v40  ;;  %vm436_vm12 = vcmp.lt.s32.totalorder %v1437_v62, 2  ;;  %v1096_v39 = vld [vmem:[#allocation8] sm:$0xf] }
 0x119   :  { %v1789_v23 = vor.u32 %v1691_v0, %v1673_v1  ;;  %v2124_v32 = vor.u32 %v1630_v8, %v1628_v5  ;;  %v639_v61 = vshrl.u32 %v634_v60, 16  ;;  %v648_v57 = vadd.s32 %v647_v24, %v637_v19  ;;  %v1175_v8 = vld [vmem:[#allocation8 + $0x4] sm:$0xf]  ;;  %v1098_v60 = vld [vmem:[#allocation8 + $0x8] sm:$0xf0] }
 0x11a   :  { %v450_v9 = vsel %vm436_vm12, %v1543_v38, %v1547_v17  ;;  %v1800_v44 = vor.u32 %v1695_v42, %v1677_v30  ;;  %v1802_v0 = vsub.s32 %v347_v20, %v350_v49  ;;  %v1804_v1 = vadd.s32 %v642_v31, %v638_v6  ;;  %v2127_v20 = vld [vmem:[#allocation25_spill] sm:$0xff] }
 0x11b   :  { %969 = vmatpush.bf16.xpose.msra.mxu2 %v2124_v32  ;;  %983 = vmatpush.bf16.xpose.msra.mxu3 %v1109_v25  ;;  %v446_v5 = vsel %vm436_vm12, %v1532_v36, %v1537_v37  ;;  %v596_v50 = vsel %vm590_vm2, %v593_v14, %v595_v58  ;;  %v649_v38 = vadd.s32 %v648_v57, %v639_v61  ;;  %v454_v17 = vand.u32 65535, %v450_v9  ;;  %v2125_v37 = vld [vmem:[#allocation20_spill] sm:$0xff] }
 0x11c   :  { %v455_v43 = vshrl.u32 %v450_v9, 16  ;;  %v1097_v42 = vor.u32 %v1176_v47, %v1096_v39  ;;  %vm352_vm10 = vcmp.lt.s32.totalorder %v1802_v0, 0  ;;  %v353_v30 = vsub.s32 0, %v1802_v0 }
 0x11d   :  { %vm652_vm11 = vc.u32 %v1784_v48, %v1804_v1  ;;  %vm743_vm14 = vcmp.lt.s32.totalorder %v1634_v10, 1  ;;  %v653_v13 = vadd.s32 1, %v649_v38  ;;  %v1819_v22 = vmul.u32 %v454_v17, %v2125_v37 }
 0x11e   :  { %v457_v36 = vmul.u32 %v455_v43, %v1421_v51  ;;  %v477_v27 = vshrl.u32 %v446_v5, 16  ;;  %v1823_v41 = vor.u32 %v1737_v2, %v2126_v16  ;;  %v1101_v63 = vor.u32 %v1175_v8, %v1098_v60 }
 0x11f   :  { %v354_v15 = vsel %vm352_vm10, %v353_v30, %v1802_v0  ;;  %v650_v12 = vmul.u32 %v2127_v20, %v596_v50  ;;  %v654_v55 = vsel %vm652_vm11, %v653_v13, %v649_v38  ;;  %v456_v6 = vmul.u32 %v454_v17, %v1421_v51  ;;  %v2128_v17 = vld [vmem:[#allocation21_spill] sm:$0xff]  ;;  %v2129_v30 = vld [vmem:[#allocation15_spill] sm:$0xff] }
 0x120   :  { %v355_v56 = vclz %v354_v15  ;;  %v460_v31 = vshll.u32 %v457_v36, 16  ;;  %v459_v21 = vmul.u32 %v455_v43, %v2125_v37  ;;  %v462_v33 = vshll.u32 %v1819_v22, 16  ;;  %v2133_v15 = vld [vmem:[#allocation24_spill] sm:$0xff] }
 0x121   :  { %v655_v26 = vadd.s32 %v654_v55, %v650_v12  ;;  %v476_v29 = vand.u32 65535, %v446_v5  ;;  %v1831_v25 = vmul.u32 %v477_v27, %v1421_v51  ;;  %v742_v4 = vor.u32 %v1763_v59, %v1741_v7  ;;  %v2134_v55 = vld [vmem:[#allocation22_spill] sm:$0xff] }
 0x122   :  { %v1083_v54 = vadd.s32 4294967294, %v355_v56  ;;  %vm464_vm15 = vc.u32 %v456_v6, %v460_v31  ;;  %v466_v2 = vadd.s32 %v460_v31, %v456_v6  ;;  %vm746_vm0 = vcmp.lt.s32.totalorder %v1634_v10, 4 }
 0x123   :  { %970 = vmatpush.bf16.xpose.msra.mxu2 %v1097_v42  ;;  %984 = vmatpush.bf16.xpose.msra.mxu3 %v1101_v63  ;;  %v656_v34 = vadd.s32 536870912, %v655_v26  ;;  %v465_v40 = vsel %vm464_vm15, 1, %v1349_v35  ;;  %v482_v18 = vshll.u32 %v1831_v25, 16  ;;  %v343_v14 = vadd.s32 %v1731_v53, %v1729_v11 }
 0x124   :  { %vm1084_vm1 = vcmp.lt.s32.totalorder %v1083_v54, 0  ;;  %v467_v45 = vadd.s32 %v465_v40, %v459_v21  ;;  %vm468_vm2 = vc.u32 %v466_v2, %v462_v33  ;;  %v478_v58 = vmul.u32 %v476_v29, %v1421_v51 }
 0x125   :  { %v358_v19 = vsel %vm1084_vm1, 0, %v1083_v54  ;;  %v1840_v24 = vshrl.u32 %v656_v34, 30  ;;  %v469_v49 = vsel %vm468_vm2, 1, %v1349_v35  ;;  %v480_v32 = vmul.u32 %v476_v29, %v2125_v37  ;;  %v2135_v54 = vld [vmem:[#allocation23_spill] sm:$0xff] }
 0x126   :  { %v359_v7 = vsub.s32 32, %v358_v19  ;;  %v363_v59 = vsub.s32 4294967266, %v358_v19  ;;  %vm745_vm3 = vcmp.lt.s32.totalorder %v1634_v10, 3  ;;  %v1850_v39 = vsel %vm743_vm14, %v1775_v28, %v1789_v23 }
 0x127   :  { %v658_v11 = vshll.u32 %v1840_v24, 30  ;;  %v461_v53 = vshrl.u32 %v457_v36, 16  ;;  %v471_v47 = vadd.s32 %v469_v49, %v467_v45  ;;  %v360_v61 = vshll.u32 %v1802_v0, %v358_v19 }
 0x128   :  { %v361_v57 = vshrl.u32 %v343_v14, %v359_v7  ;;  %v364_v9 = vadd.s32 127, %v363_v59  ;;  %vm486_vm4 = vc.u32 %v478_v58, %v482_v18  ;;  %v481_v5 = vmul.u32 %v477_v27, %v2125_v37  ;;  %v2136_v59 = vld [vmem:[#allocation17_spill] sm:$0xff] }
 0x129   :  { %v1854_v51 = vsub.s32 %v655_v26, %v658_v11  ;;  %v487_v8 = vsel %vm486_vm4, 1, %v1349_v35  ;;  %v488_v60 = vadd.s32 %v482_v18, %v478_v58  ;;  %v419_v43 = vshrl.u32 %v2123_v46, %v2128_v17 }
 0x12a   :  { %v362_v50 = vor.u32 %v361_v57, %v360_v61  ;;  %v365_v38 = vshll.u32 %v364_v9, 23  ;;  %v484_v42 = vshll.u32 %v480_v32, 16  ;;  %vm251_vm6 = vcmp.lt.s32.totalorder %v2129_v30, 0 }
 0x12b   :  { %vm660_vm9 = vcmp.lt.s32.totalorder %v1854_v51, 0  ;;  %v661_v0 = vsub.s32 0, %v1854_v51  ;;  %v472_v13 = vadd.s32 %v471_v47, %v461_v53  ;;  %v489_v36 = vadd.s32 %v487_v8, %v481_v5 }
 0x12c   :  { %v752_v37 = vsel %vm746_vm0, %v1823_v41, 920167782  ;;  %v2130_v27 = vand.u32 2147483647, %v2129_v30  ;;  %v366_v63 = vor.u32 4788187, %v365_v38  ;;  %vm490_vm10 = vc.u32 %v488_v60, %v484_v42 }
 0x12d   :  { %v440_v20 = vsel %vm438_vm5, %v2133_v15, 2102212464  ;;  %v756_v12 = vsel %vm746_vm0, %v742_v4, 1326507024  ;;  %v662_v56 = vsel %vm660_vm9, %v661_v0, %v1854_v51  ;;  %v439_v6 = vsel %vm435_vm7, %v419_v43, %v2134_v55  ;;  %v2137_v43 = vld [vmem:[#allocation18_spill] sm:$0xff] }
 0x12e   :  { %vm1868_vm13 = vcmp.le.f32.partialorder %v2130_v27, 0.7853982  ;;  %v463_v31 = vshrl.u32 %v1819_v22, 16  ;;  %v367_v26 = vand.u32 2147483647, %v366_v63  ;;  %v369_v21 = vcvt.s32.f32 %v362_v50 }
 0x12f   :  { %v663_v33 = vclz %v662_v56  ;;  %v491_v29 = vsel %vm490_vm10, 1, %v1349_v35  ;;  %v441_v2 = vsel %vm437_vm8, %v2135_v54, %v440_v20  ;;  %v483_v4 = vshrl.u32 %v1831_v25, 16  ;;  %v2141_v56 = vld [vmem:[#allocation27_spill] sm:$0xff] }
 0x130   :  { %v1886_v34 = vadd.s32 %v472_v13, %v463_v31  ;;  %v493_v40 = vadd.s32 %v491_v29, %v489_v36  ;;  %v753_v45 = vsel %vm745_vm3, %v1800_v44, %v752_v37  ;;  %v755_v22 = vsel %vm743_vm14, %v1789_v23, %v1800_v44 }
 0x131   :  { %v370_v18 = vmul.f32 %v369_v21, %v367_v26  ;;  %v1089_v14 = vadd.s32 4294967294, %v663_v33  ;;  %v757_v19 = vsel %vm745_vm3, %v1823_v41, %v756_v12  ;;  %v485_v49 = vshrl.u32 %v480_v32, 16  ;;  %v2142_v21 = vld [vmem:[#allocation28_spill] sm:$0xff] }
 0x132   :  { %v1899_v7 = vadd.s32 %v488_v60, %v484_v42  ;;  %v494_v25 = vadd.s32 %v493_v40, %v483_v4  ;;  %vm559_vm5 = vcmp.lt.s32.totalorder %v2136_v59, 0  ;;  %v373_v11 = vsub.s32 4, %v1770_v3 }
 0x133   :  { %v371_v58 = vxor.u32 2147483648, %v370_v18  ;;  %vm1090_vm7 = vcmp.lt.s32.totalorder %v1089_v14, 0  ;;  %v442_v53 = vsel %vm436_vm12, %v439_v6, %v441_v2  ;;  %v651_v47 = vadd.s32 %v1804_v1, %v1784_v48 }
 0x134   :  { %v666_v61 = vsel %vm1090_vm7, 0, %v1089_v14  ;;  %v495_v57 = vadd.s32 %v494_v25, %v485_v49  ;;  %vm498_vm8 = vc.u32 %v1886_v34, %v1899_v7  ;;  %vm744_vm11 = vcmp.lt.s32.totalorder %v1634_v10, 2 }
 0x135   :  { %v372_v41 = vsel %vm251_vm6, %v371_v58, %v370_v18  ;;  %v667_v32 = vsub.s32 32, %v666_v61  ;;  %v671_v9 = vsub.s32 4294967266, %v666_v61  ;;  %v668_v5 = vshll.u32 %v1854_v51, %v666_v61 }
 0x136   :  { %v1915_v62 = vsel %vm1868_vm13, %v2129_v30, %v372_v41  ;;  %v499_v48 = vadd.s32 1, %v495_v57  ;;  %v758_v1 = vsel %vm744_vm11, %v755_v22, %v757_v19  ;;  %v681_v17 = vsub.s32 4, %v1840_v24 }
 0x137   :  { %v377_v8 = vmul.f32 %v1915_v62, %v1915_v62  ;;  %v669_v60 = vshrl.u32 %v651_v47, %v667_v32  ;;  %v672_v50 = vadd.s32 127, %v671_v9  ;;  %v762_v38 = vand.u32 65535, %v758_v1 }
 0x138   :  { %v496_v42 = vmul.u32 %v2137_v43, %v442_v53  ;;  %v500_v0 = vsel %vm498_vm8, %v499_v48, %v495_v57  ;;  %v763_v13 = vshrl.u32 %v758_v1, 16  ;;  %v374_v63 = vsel %vm251_vm6, %v373_v11, %v1770_v3 }
 0x139   :  { %v378_v36 = vmul.f32 -0.001358992, %v377_v8  ;;  %v385_v37 = vmul.f32 -0.00019511016, %v377_v8  ;;  %v670_v27 = vor.u32 %v669_v60, %v668_v5  ;;  %v673_v51 = vshll.u32 %v672_v50, 23 }
 0x13a   :  { %v2138_v15 = vand.u32 2147483647, %v2136_v59  ;;  %v501_v12 = vadd.s32 %v500_v0, %v496_v42  ;;  %v1934_v55 = vmul.u32 %v763_v13, %v2141_v56  ;;  %v1937_v33 = vmul.u32 %v762_v38, %v2142_v21 }
 0x13b   :  { %v379_v6 = vadd.f32 0.041655596, %v378_v36  ;;  %v386_v31 = vadd.f32 0.008332121, %v385_v37  ;;  %v674_v26 = vor.u32 4788187, %v673_v51  ;;  %v682_v3 = vsel %vm559_vm5, %v681_v17, %v1840_v24 }
 0x13c   :  { %vm1929_vm12 = vcmp.le.f32.partialorder %v2138_v15, 0.7853982  ;;  %v502_v29 = vadd.s32 536870912, %v501_v12  ;;  %v764_v54 = vmul.u32 %v762_v38, %v2141_v56  ;;  %v768_v2 = vshll.u32 %v1934_v55, 16 }
 0x13d   :  { %v387_v4 = vmul.f32 %v386_v31, %v377_v8  ;;  %v675_v40 = vand.u32 2147483647, %v674_v26  ;;  %v677_v22 = vcvt.s32.f32 %v670_v27  ;;  %v754_v18 = vsel %vm744_vm11, %v1850_v39, %v753_v45 }
 0x13e   :  { %v380_v14 = vmul.f32 %v379_v6, %v377_v8  ;;  %v1947_v19 = vshrl.u32 %v502_v29, 30  ;;  %vm772_vm15 = vc.u32 %v764_v54, %v768_v2  ;;  %v774_v49 = vadd.s32 %v768_v2, %v764_v54 }
 0x13f   :  { %v376_v24 = vsel %vm1868_vm13, 0, %v374_v63  ;;  %v388_v25 = vadd.f32 -0.16666654, %v387_v4  ;;  %v678_v58 = vmul.f32 %v677_v22, %v675_v40  ;;  %v770_v11 = vshll.u32 %v1937_v33, 16 }
 0x140   :  { %v684_v53 = vsel %vm1929_vm12, 0, %v682_v3  ;;  %v504_v47 = vshll.u32 %v1947_v19, 30  ;;  %v773_v61 = vsel %vm772_vm15, 1, %v1349_v35  ;;  %v767_v45 = vmul.u32 %v763_v13, %v2142_v21 }
 0x141   :  { %v679_v39 = vxor.u32 2147483648, %v678_v58  ;;  %vm776_vm1 = vc.u32 %v774_v49, %v770_v11  ;;  %v785_v57 = vshrl.u32 %v754_v18, 16  ;;  %v381_v41 = vadd.f32 -0.4999988, %v380_v14 }
 0x142   :  { %v389_v32 = vmul.f32 %v388_v25, %v377_v8  ;;  %v1957_v16 = vand.u32 3, %v376_v24  ;;  %v1959_v9 = vsub.s32 %v501_v12, %v504_v47  ;;  %v1963_v48 = vand.u32 3, %v684_v53 }
 0x143   :  { %v680_v5 = vsel %vm559_vm5, %v679_v39, %v678_v58  ;;  %v775_v1 = vadd.s32 %v773_v61, %v767_v45  ;;  %v784_v60 = vand.u32 65535, %v754_v18  ;;  %v777_v17 = vsel %vm776_vm1, 1, %v1349_v35 }
 0x144   :  { %v1968_v50 = vsel %vm1929_vm12, %v2136_v59, %v680_v5  ;;  %vm506_vm2 = vcmp.lt.s32.totalorder %v1959_v9, 0  ;;  %v507_v38 = vsub.s32 0, %v1959_v9  ;;  %v727_v42 = vshrl.u32 %v2123_v46, %v1649_v52 }
 0x145   :  { %v685_v43 = vmul.f32 %v1968_v50, %v1968_v50  ;;  %v748_v0 = vsel %vm746_vm0, %v1800_v44, 2102212464  ;;  %v787_v13 = vmul.u32 %v785_v57, %v2141_v56  ;;  %v382_v36 = vmul.f32 %v381_v41, %v377_v8 }
 0x146   :  { %v390_v37 = vadd.f32 1.0, %v389_v32  ;;  %v497_v27 = vadd.s32 %v1899_v7, %v1886_v34  ;;  %v508_v51 = vsel %vm506_vm2, %v507_v38, %v1959_v9  ;;  %v747_v20 = vsel %vm743_vm14, %v727_v42, %v1775_v28 }
 0x147   :  { %v686_v63 = vmul.f32 -0.001358992, %v685_v43  ;;  %v693_v15 = vmul.f32 -0.00019511016, %v685_v43  ;;  %v779_v52 = vadd.s32 %v777_v17, %v775_v1  ;;  %v509_v46 = vclz %v508_v51 }
 0x148   :  { %v749_v44 = vsel %vm745_vm3, %v1789_v23, %v748_v0  ;;  %v786_v8 = vmul.u32 %v784_v60, %v2141_v56  ;;  %v788_v12 = vmul.u32 %v784_v60, %v2142_v21  ;;  %vm395_vm0 = vcmp.eq.s32.totalorder %v1957_v16, 0 }
 0x149   :  { %v687_v34 = vadd.f32 0.041655596, %v686_v63  ;;  %v694_v7 = vadd.f32 0.008332121, %v693_v15  ;;  %v769_v6 = vshrl.u32 %v1934_v55, 16  ;;  %v790_v31 = vshll.u32 %v787_v13, 16 }
 0x14a   :  { %v383_v26 = vadd.f32 1.0, %v382_v36  ;;  %v391_v28 = vmul.f32 %v390_v37, %v1915_v62  ;;  %v1086_v3 = vadd.s32 4294967294, %v509_v46  ;;  %v771_v29 = vshrl.u32 %v1937_v33, 16 }
 0x14b   :  { %v688_v54 = vmul.f32 %v687_v34, %v685_v43  ;;  %v695_v2 = vmul.f32 %v694_v7, %v685_v43  ;;  %v780_v23 = vadd.s32 %v779_v52, %v769_v6  ;;  %v789_v56 = vmul.u32 %v785_v57, %v2142_v21 }
 0x14c   :  { %vm398_vm14 = vcmp.eq.s32.totalorder %v1957_v16, 2  ;;  %vm1087_vm3 = vcmp.lt.s32.totalorder %v1086_v3, 0  ;;  %v792_v4 = vshll.u32 %v788_v12, 16  ;;  %vm794_vm4 = vc.u32 %v786_v8, %v790_v31 }
 0x14d   :  { %v796_v40 = vadd.s32 %v790_v31, %v786_v8  ;;  %vm394_vm6 = vcmp.lt.s32.totalorder %v1957_v16, 2  ;;  %v689_v55 = vadd.f32 -0.4999988, %v688_v54  ;;  %v696_v22 = vadd.f32 -0.16666654, %v695_v2 }
 0x14e   :  { %v512_v18 = vsel %vm1087_vm3, 0, %v1086_v3  ;;  %v795_v62 = vsel %vm794_vm4, 1, %v1349_v35  ;;  %v396_v14 = vxor.u32 2147483648, %v391_v28  ;;  %v399_v25 = vxor.u32 2147483648, %v383_v26 }
 0x14f   :  { %v513_v33 = vsub.s32 32, %v512_v18  ;;  %v517_v49 = vsub.s32 4294967266, %v512_v18  ;;  %v797_v24 = vadd.s32 %v795_v62, %v789_v56  ;;  %v690_v58 = vmul.f32 %v689_v55, %v685_v43 }
 0x150   :  { %v697_v21 = vmul.f32 %v696_v22, %v685_v43  ;;  %vm798_vm9 = vc.u32 %v796_v40, %v792_v4  ;;  %v791_v47 = vshrl.u32 %v787_v13, 16  ;;  %v514_v57 = vshll.u32 %v1959_v9, %v512_v18 }
 0x151   :  { %v515_v11 = vshrl.u32 %v497_v27, %v513_v33  ;;  %v518_v53 = vadd.s32 127, %v517_v49  ;;  %v799_v61 = vsel %vm798_vm9, 1, %v1349_v35  ;;  %v691_v39 = vadd.f32 1.0, %v690_v58 }
 0x152   :  { %v698_v45 = vadd.f32 1.0, %v697_v21  ;;  %v801_v41 = vadd.s32 %v799_v61, %v797_v24  ;;  %v397_v32 = vsel %vm395_vm0, %v383_v26, %v396_v14  ;;  %v781_v1 = vadd.s32 %v780_v23, %v771_v29 }
 0x153   :  { %v519_v5 = vshll.u32 %v518_v53, 23  ;;  %v793_v60 = vshrl.u32 %v788_v12, 16  ;;  %v707_v17 = vxor.u32 2147483648, %v691_v39  ;;  %v516_v43 = vor.u32 %v515_v11, %v514_v57 }
 0x154   :  { %v699_v38 = vmul.f32 %v698_v45, %v1968_v50  ;;  %v802_v42 = vadd.s32 %v801_v41, %v791_v47  ;;  %vm702_vm13 = vcmp.lt.s32.totalorder %v1963_v48, 2  ;;  %vm703_vm10 = vcmp.eq.s32.totalorder %v1963_v48, 0 }
 0x155   :  { %v520_v35 = vor.u32 4788187, %v519_v5  ;;  %v800_v0 = vadd.s32 %v796_v40, %v792_v4  ;;  %v400_v9 = vsel %vm398_vm14, %v399_v25, %v391_v28  ;;  %v750_v36 = vsel %vm744_vm11, %v747_v20, %v749_v44  ;;  %v2143_v20 = vld [vmem:[#allocation26_spill] sm:$0xff]  ;;  %v2144_v28 = vld [vmem:[#allocation16_spill] sm:$0xff] }
 0x156   :  { %v704_v13 = vxor.u32 2147483648, %v699_v38  ;;  %v803_v37 = vadd.s32 %v802_v42, %v793_v60  ;;  %v401_v50 = vsel %vm394_vm6, %v397_v32, %v400_v9  ;;  %vm706_vm5 = vcmp.eq.s32.totalorder %v1963_v48, 2  ;;  %v2148_v60 = vld [vmem:[#allocation19_spill] sm:$0xff] }
 0x157   :  { %v521_v27 = vand.u32 2147483647, %v520_v35  ;;  %vm806_vm7 = vc.u32 %v781_v1, %v800_v0  ;;  %v708_v63 = vsel %vm706_vm5, %v707_v17, %v699_v38  ;;  %v523_v15 = vcvt.s32.f32 %v516_v43 }
 0x158   :  { %v705_v51 = vsel %vm703_vm10, %v691_v39, %v704_v13  ;;  %v807_v52 = vadd.s32 1, %v803_v37  ;;  %vm392_vm8 = vweird.f32 %v2129_v30  ;;  %vm700_vm12 = vweird.f32 %v2136_v59 }
 0x159   :  { %v709_v10 = vsel %vm702_vm13, %v705_v51, %v708_v63  ;;  %v804_v46 = vmul.u32 %v2143_v20, %v750_v36  ;;  %v402_v44 = vsel %vm392_vm8, nan, %v401_v50  ;;  %v524_v8 = vmul.f32 %v523_v15, %v521_v27 }
 0x15a   :  { %v710_v16 = vsel %vm700_vm12, nan, %v709_v10  ;;  %v808_v12 = vsel %vm806_vm7, %v807_v52, %v803_v37  ;;  %vm405_vm11 = vcmp.lt.s32.totalorder %v2144_v28, 0  ;;  %v2145_v3 = vand.u32 2147483647, %v2144_v28 }
 0x15b   :  { %v865_v34 = vpack.c.bf16 %v710_v16, %v402_v44  ;;  %v809_v7 = vadd.s32 %v808_v12, %v804_v46  ;;  %v525_v31 = vxor.u32 2147483648, %v524_v8  ;;  %v805_v18 = vadd.s32 %v800_v0, %v781_v1 }
 0x15c   :  { %vm2024_vm15 = vcmp.le.f32.partialorder %v2145_v3, 0.7853982  ;;  %vm713_vm0 = vcmp.lt.s32.totalorder %v2148_v60, 0  ;;  %v2149_v38 = vand.u32 2147483647, %v2148_v60  ;;  %v527_v42 = vsub.s32 4, %v1947_v19 }
 0x15d   :  { %971 = vmatmul.bf16.vlgmr.msra.gmra.mxu2 %v865_v34  ;;  %v810_v6 = vadd.s32 536870912, %v809_v7  ;;  %v526_v59 = vsel %vm405_vm11, %v525_v31, %v524_v8  ;;  %vm546_vm5 = vweird.f32 %v2144_v28  ;;  %vm854_vm7 = vweird.f32 %v2148_v60 }
 0x15e   :  { %v529_v54 = vsel %vm2024_vm15, %v2144_v28, %v526_v59  ;;  %vm2034_vm14 = vcmp.le.f32.partialorder %v2149_v38, 0.7853982  ;;  %v528_v50 = vsel %vm405_vm11, %v527_v42, %v1947_v19 }
 0x15f   :  { %v811_v26 = vshrl.u32 %v810_v6, 30  ;;  %v531_v56 = vmul.f32 %v529_v54, %v529_v54  ;;  %v530_v52 = vsel %vm2024_vm15, 0, %v528_v50 }
 0x160   :  { %v547_v34 = vand.u32 3, %v530_v52 }
 0x161   :  { %v812_v30 = vshll.u32 %v811_v26, 30  ;;  %v539_v55 = vmul.f32 -0.00019511016, %v531_v56  ;;  %v532_v58 = vmul.f32 -0.001358992, %v531_v56  ;;  %v835_v27 = vsub.s32 4, %v811_v26 }
 0x162   :  { %vm549_vm3 = vcmp.eq.s32.totalorder %v547_v34, 0  ;;  %vm552_vm4 = vcmp.eq.s32.totalorder %v547_v34, 2  ;;  %vm548_vm6 = vcmp.lt.s32.totalorder %v547_v34, 2 }
 0x163   :  { %v813_v48 = vsub.s32 %v809_v7, %v812_v30  ;;  %v540_v33 = vadd.f32 0.008332121, %v539_v55  ;;  %v533_v61 = vadd.f32 0.041655596, %v532_v58  ;;  %v836_v44 = vsel %vm713_vm0, %v835_v27, %v811_v26 }
 0x164   :  { %v838_v19 = vsel %vm2034_vm14, 0, %v836_v44 }
 0x165   :  { %vm814_vm1 = vcmp.lt.s32.totalorder %v813_v48, 0  ;;  %v815_v2 = vsub.s32 0, %v813_v48  ;;  %v541_v53 = vmul.f32 %v540_v33, %v531_v56  ;;  %v534_v32 = vmul.f32 %v533_v61, %v531_v56 }
 0x166   :  { %v855_v3 = vand.u32 3, %v838_v19 }
 0x167   :  { %v816_v23 = vsel %vm814_vm1, %v815_v2, %v813_v48  ;;  %v542_v57 = vadd.f32 -0.16666654, %v541_v53  ;;  %v535_v0 = vadd.f32 -0.4999988, %v534_v32 }
 0x168   :  { %v817_v4 = vclz %v816_v23  ;;  %vm857_vm9 = vcmp.eq.s32.totalorder %v855_v3, 0  ;;  %vm860_vm13 = vcmp.eq.s32.totalorder %v855_v3, 2  ;;  %vm856_vm10 = vcmp.lt.s32.totalorder %v855_v3, 2 }
 0x169   :  { %v543_v1 = vmul.f32 %v542_v57, %v531_v56  ;;  %v536_v51 = vmul.f32 %v535_v0, %v531_v56 }
 0x16a   :  { %v1092_v40 = vadd.s32 4294967294, %v817_v4 }
 0x16b   :  { %v544_v13 = vadd.f32 1.0, %v543_v1  ;;  %v537_v16 = vadd.f32 1.0, %v536_v51 }
 0x16c   :  { %vm1093_vm2 = vcmp.lt.s32.totalorder %v1092_v40, 0 }
 0x16d   :  { %v820_v22 = vsel %vm1093_vm2, 0, %v1092_v40  ;;  %v545_v10 = vmul.f32 %v544_v13, %v529_v54  ;;  %v553_v30 = vxor.u32 2147483648, %v537_v16 }
 0x16e   :  { %v821_v62 = vsub.s32 32, %v820_v22  ;;  %v825_v14 = vsub.s32 4294967266, %v820_v22  ;;  %v822_v49 = vshll.u32 %v813_v48, %v820_v22 }
 0x16f   :  { %v550_v7 = vxor.u32 2147483648, %v545_v10  ;;  %v554_v26 = vsel %vm552_vm4, %v553_v30, %v545_v10 }
 0x170   :  { %v823_v24 = vshrl.u32 %v805_v18, %v821_v62  ;;  %v826_v25 = vadd.s32 127, %v825_v14 }
 0x171   :  { %v551_v29 = vsel %vm549_vm3, %v537_v16, %v550_v7 }
 0x172   :  { %v824_v21 = vor.u32 %v823_v24, %v822_v49  ;;  %v827_v11 = vshll.u32 %v826_v25, 23  ;;  %v555_v56 = vsel %vm548_vm6, %v551_v29, %v554_v26 }
 0x173   :  { %v556_v22 = vsel %vm546_vm5, nan, %v555_v56 }
 0x174   :  { %v828_v47 = vor.u32 4788187, %v827_v11  ;;  %v831_v45 = vcvt.s32.f32 %v824_v21 }
 0x176   :  { %v829_v39 = vand.u32 2147483647, %v828_v47 }
 0x178   :  { %v832_v41 = vmul.f32 %v831_v45, %v829_v39 }
 0x17a   :  { %v833_v5 = vxor.u32 2147483648, %v832_v41 }
 0x17c   :  { %v834_v43 = vsel %vm713_vm0, %v833_v5, %v832_v41 }
 0x17d   :  { %v837_v35 = vsel %vm2034_vm14, %v2148_v60, %v834_v43 }
 0x17e   :  { %v839_v9 = vmul.f32 %v837_v35, %v837_v35 }
 0x180   :  { %v840_v36 = vmul.f32 -0.001358992, %v839_v9  ;;  %v847_v37 = vmul.f32 -0.00019511016, %v839_v9 }
 0x182   :  { %v841_v63 = vadd.f32 0.041655596, %v840_v36  ;;  %v848_v15 = vadd.f32 0.008332121, %v847_v37 }
 0x184   :  { %v842_v20 = vmul.f32 %v841_v63, %v839_v9  ;;  %v849_v46 = vmul.f32 %v848_v15, %v839_v9 }
 0x186   :  { %v843_v8 = vadd.f32 -0.4999988, %v842_v20  ;;  %v850_v12 = vadd.f32 -0.16666654, %v849_v46 }
 0x188   :  { %v844_v6 = vmul.f32 %v843_v8, %v839_v9  ;;  %v851_v31 = vmul.f32 %v850_v12, %v839_v9 }
 0x18a   :  { %v845_v59 = vadd.f32 1.0, %v844_v6  ;;  %v852_v48 = vadd.f32 1.0, %v851_v31 }
 0x18c   :  { %v853_v54 = vmul.f32 %v852_v48, %v837_v35  ;;  %v861_v2 = vxor.u32 2147483648, %v845_v59 }
 0x18e   :  { %v858_v23 = vxor.u32 2147483648, %v853_v54  ;;  %v862_v40 = vsel %vm860_vm13, %v861_v2, %v853_v54 }
 0x190   :  { %v859_v4 = vsel %vm857_vm9, %v845_v59, %v858_v23 }
 0x191   :  { %v863_v55 = vsel %vm856_vm10, %v859_v4, %v862_v40 }
 0x192   :  { %v864_v18 = vsel %vm854_vm7, nan, %v863_v55 }
 0x193   :  { %v866_v62 = vpack.c.bf16 %v864_v18, %v556_v22 }
 0x195   :  { %985 = vmatmul.bf16.vlgmr.msra.gmra.mxu3 %v866_v62 }
 0x1e0   :  { %v972_v14 = vpop.f32.mrf.mxu2 }
 0x1e8   :  { %v974_v24 = vpop.f32.mrf.mxu2 }
 0x218   :  { %v986_v33 = vpop.f32.mrf.mxu3 }
 0x219   :  { %v987_v49 = vadd.f32 %v986_v33, %v972_v14 }
 0x21b   :  { %991 = vst [vmem:[#allocation10] sm:$0xff] %v987_v49 }
 0x220   :  { %v988_v25 = vpop.f32.mrf.mxu3 }
 0x221   :  { %v989_v28 = vadd.f32 %v988_v25, %v974_v24 }
 0x223   :  { %992 = vst [vmem:[#allocation10 + $0x8] sm:$0xff] %v989_v28 }
 0x224   :  { %1005 = dma.vmem_to_hbm [thread:$0]  %s998_s3, 256, %s1000_s13, [#allocation4], %s1341_s9, %s1341_s9, %s1342_s10  }
 0x225   :  { %1333 = dma.done.wait [#allocation4], 256  }
 0x226   :  { %1334 = vsyncadd [#allocation4], 4294967040 }
 0x227   :  { %1010 = vsyncpa [#allocation3], 1 }
 0x228   :  { %1011 = vsyncpa [#allocation6], 1 }
 0x229   :  { %1012 = vsyncpa [#allocation9], 1 }
 0x22a   :  { %1013 = vsyncpa [#allocation4], 1 }

</bundles_post_ra>
